<compile_context>
chip_gen: v5e
topology: v5e:2x2
jax: 0.10.0
libtpu: 0.0.40
codegen_flags: <defaults>
</compile_context>

<pallas_src>
import functools

import numpy as np
import jax
import jax.numpy as jnp
from jax.experimental import pallas as pl
from jax.experimental.pallas import tpu as pltpu


def _network_cont_kernel(x_ref,
                         w1_ref, w2_ref, w3_ref, w4_ref,
                         misc_ref,
                         o_ref,
                         *, hid_pad, out_pad):
    # x tile: (TB, IN_PAD) bf16; weights bf16; misc block f32 rows:
    #   0..2 = b1..b3 (HID_PAD cols), 3 = b4, 4 = scale, 5 = offset (OUT_PAD cols).
    x = x_ref[...]

    b1 = misc_ref[0:1, :hid_pad]
    b2 = misc_ref[1:2, :hid_pad]
    b3 = misc_ref[2:3, :hid_pad]
    b4 = misc_ref[3:4, :out_pad]
    scale = misc_ref[4:5, :out_pad]
    offset = misc_ref[5:6, :out_pad]

    # input_layer (no activation in the reference forward)
    h = jnp.dot(x, w1_ref[...], preferred_element_type=jnp.float32) + b1

    # hidden + relu
    h = jnp.dot(h.astype(jnp.bfloat16), w2_ref[...],
                preferred_element_type=jnp.float32) + b2
    h = jnp.maximum(h, 0.0)

    # hidden2 + relu
    h = jnp.dot(h.astype(jnp.bfloat16), w3_ref[...],
                preferred_element_type=jnp.float32) + b3
    h = jnp.maximum(h, 0.0)

    # output_layer + sigmoid (EUP exp + approx reciprocal, no VPU divide)
    z = jnp.dot(h.astype(jnp.bfloat16), w4_ref[...],
                preferred_element_type=jnp.float32) + b4
    res = pl.reciprocal(1.0 + jnp.exp(-z), approx=True)

    # rescale to output_range: res * (high - low) + low ; lane-dense store
    o_ref[...] = (res * scale + offset).astype(o_ref.dtype)


def _round_up(n, m):
    return ((n + m - 1) // m) * m


def _cdiv(a, b):
    return -(-a // b)


def _pad2(a, rows, cols, dtype):
    a = jnp.asarray(a, dtype)
    return jnp.zeros((rows, cols), dtype).at[:a.shape[0], :a.shape[1]].set(a)


def _tile_plan(batch, tile_b):
    """Evenly-split, bf16-aligned batch tiling."""
    n_tiles = max(1, _cdiv(batch, tile_b))
    # For large batches make sure there are >= 2 tiles so the "parallel" grid
    # axis can shard across both v7x TensorCores (costs ~nothing elsewhere).
    if batch >= 256 and n_tiles < 2:
        n_tiles = 2
    granule = 128 if batch >= 128 else 16      # bf16 native tile is (16, 128)
    tb = _round_up(_cdiv(batch, n_tiles), granule)
    return tb, n_tiles


def make_network_cont_forward(params, output_low, output_high, *,
                              tile_b=1024,
                              out_dtype=jnp.bfloat16,
                              return_padded=False):
    """Pre-pads / pre-casts the parameters once and returns forward(x).

    params: dict with w1..w4 of shape (in, out) and b1..b4 of shape (1, out).
    The returned `forward` is jit-friendly (wrap it in jax.jit so the x-padding
    and the output slice fuse with the Pallas call).
    """
    in_dim = params["w1"].shape[0]
    hid = params["w1"].shape[1]
    out_dim = params["w4"].shape[1]

    # Lane-dense padded dims (multiples of 128).  Zero-padding is exact:
    # padded hidden columns stay zero through relu and hit zero weight rows of
    # the next layer; padded output columns are sliced off / ignored.
    in_pad = _round_up(in_dim, 128)
    hid_pad = _round_up(hid, 128)
    out_pad = _round_up(out_dim, 128)
    max_pad = max(hid_pad, out_pad)

    # --- one-time parameter preparation (cached in the closure) -------------
    w1 = _pad2(params["w1"], in_pad, hid_pad, jnp.bfloat16)
    w2 = _pad2(params["w2"], hid_pad, hid_pad, jnp.bfloat16)
    w3 = _pad2(params["w3"], hid_pad, hid_pad, jnp.bfloat16)
    w4 = _pad2(params["w4"], hid_pad, out_pad, jnp.bfloat16)

    misc = jnp.zeros((8, max_pad), jnp.float32)
    misc = misc.at[0, :hid].set(jnp.asarray(params["b1"], jnp.float32).reshape(-1))
    misc = misc.at[1, :hid].set(jnp.asarray(params["b2"], jnp.float32).reshape(-1))
    misc = misc.at[2, :hid].set(jnp.asarray(params["b3"], jnp.float32).reshape(-1))
    misc = misc.at[3, :out_dim].set(jnp.asarray(params["b4"], jnp.float32).reshape(-1))
    misc = misc.at[4, :out_dim].set(
        jnp.asarray(output_high, jnp.float32).reshape(-1)
        - jnp.asarray(output_low, jnp.float32).reshape(-1))
    misc = misc.at[5, :out_dim].set(jnp.asarray(output_low, jnp.float32).reshape(-1))

    kernel = functools.partial(_network_cont_kernel,
                               hid_pad=hid_pad, out_pad=out_pad)

    def forward(x):
        batch = x.shape[0]
        tb, n_tiles = _tile_plan(batch, tile_b)
        b_padded = tb * n_tiles

        # Only x is padded / cast per call.
        x_p = jnp.zeros((b_padded, in_pad), jnp.bfloat16)
        x_p = x_p.at[:batch, :in_dim].set(x.astype(jnp.bfloat16))

        # Weights / misc: constant index_map -> fetched once, VMEM-resident
        # across all batch tiles.
        def resident(shape):
            return pl.BlockSpec(shape, lambda i: (0, 0))

        out_padded = pl.pallas_call(
            kernel,
            out_shape=jax.ShapeDtypeStruct((b_padded, out_pad), out_dtype),
            grid=(n_tiles,),
            in_specs=[
                pl.BlockSpec((tb, in_pad), lambda i: (i, 0)),   # x: batch-tiled
                resident((in_pad, hid_pad)),
                resident((hid_pad, hid_pad)),
                resident((hid_pad, hid_pad)),
                resident((hid_pad, out_pad)),
                resident((8, max_pad)),                          # b1..b4, scale, offset
            ],
            out_specs=pl.BlockSpec((tb, out_pad), lambda i: (i, 0)),
            compiler_params=pltpu.CompilerParams(
                dimension_semantics=("parallel",),   # shard batch tiles across TCs
            ),
        )(x_p, w1, w2, w3, w4, misc)

        if return_padded:
            return out_padded        # (b_padded, out_pad) lane-dense layout
        return out_padded[:batch, :out_dim]

    return forward


def init_params(key, input_shape, hidden, output_size):
    """Deterministic init mimicking nn.Linear defaults; output weight ~ U(-0.003, 0.003)."""
    ks = jax.random.split(key, 8)

    def linear(kw, kb, fan_in, fan_out, w_bound=None):
        bound = 1.0 / np.sqrt(fan_in)
        wb = bound if w_bound is None else w_bound
        # stored as (in, out) = transpose of PyTorch's (out, in)
        w = jax.random.uniform(kw, (fan_in, fan_out), jnp.float32, -wb, wb)
        b = jax.random.uniform(kb, (1, fan_out), jnp.float32, -bound, bound)
        return w, b

    w1, b1 = linear(ks[0], ks[1], input_shape, hidden)
    w2, b2 = linear(ks[2], ks[3], hidden, hidden)
    w3, b3 = linear(ks[4], ks[5], hidden, hidden)
    w4, b4 = linear(ks[6], ks[7], hidden, output_size, w_bound=0.003)
    return dict(w1=w1, b1=b1, w2=w2, b2=b2, w3=w3, b3=b3, w4=w4, b4=b4)


if __name__ == "__main__":
    key = jax.random.PRNGKey(0)
    batch, input_shape, hidden, output_size = 2, 16, 64, 4

    k_x, k_p = jax.random.split(key)
    x = jax.random.normal(k_x, (batch, input_shape), jnp.float32)
    params = init_params(k_p, input_shape, hidden, output_size)

    # output_range = (low, high), numpy arrays in the PyTorch module
    output_low = jnp.full((output_size,), -2.0, jnp.float32)
    output_high = jnp.full((output_size,), 2.0, jnp.float32)

    # Build (pads/casts parameters once), jit (fuses x-pad + output slice), run.
    forward = jax.jit(make_network_cont_forward(params, output_low, output_high))
    out = forward(x)
    out = jax.block_until_ready(out)

    # Reference in plain f32 JAX; kernel uses bf16 MXU inputs, approx reciprocal
    # and a bf16 output store, so compare with a bf16-appropriate tolerance.
    def ref(xv):
        h = xv @ params["w1"] + params["b1"]
        h = jnp.maximum(h @ params["w2"] + params["b2"], 0.0)
        h = jnp.maximum(h @ params["w3"] + params["b3"], 0.0)
        r = jax.nn.sigmoid(h @ params["w4"] + params["b4"])
        return r * (output_high - output_low) + output_low

    np.testing.assert_allclose(np.asarray(out, dtype=np.float32),
                               np.asarray(ref(x)),
                               rtol=5e-2, atol=5e-2)
    print("KERNEL_OK")
</pallas_src>

<mosaic_0001>
module attributes {stable_mosaic.version = 11 : i64} {
  func.func @_network_cont_kernel(%arg0: i32, %arg1: memref<16x128xbf16, #tpu.memory_space<vmem>>, %arg2: memref<128x128xbf16, #tpu.memory_space<vmem>>, %arg3: memref<128x128xbf16, #tpu.memory_space<vmem>>, %arg4: memref<128x128xbf16, #tpu.memory_space<vmem>>, %arg5: memref<128x128xbf16, #tpu.memory_space<vmem>>, %arg6: memref<8x128xf32, #tpu.memory_space<vmem>>, %arg7: memref<16x128xbf16, #tpu.memory_space<vmem>>) attributes {dimension_semantics = [#tpu.dimension_semantics<parallel>], iteration_bounds = array<i64: 1>, scalar_prefetch = 0 : i64, scratch_operands = 0 : i64, tpu.core_type = #tpu.core_type<tc>, window_params = [{transform_indices = @transform_0, window_bounds = array<i64: 16, 128>}, {pipeline_mode = #tpu.pipeline_mode<synchronous>, transform_indices = @transform_1, window_bounds = array<i64: 128, 128>}, {pipeline_mode = #tpu.pipeline_mode<synchronous>, transform_indices = @transform_2, window_bounds = array<i64: 128, 128>}, {pipeline_mode = #tpu.pipeline_mode<synchronous>, transform_indices = @transform_3, window_bounds = array<i64: 128, 128>}, {pipeline_mode = #tpu.pipeline_mode<synchronous>, transform_indices = @transform_4, window_bounds = array<i64: 128, 128>}, {pipeline_mode = #tpu.pipeline_mode<synchronous>, transform_indices = @transform_5, window_bounds = array<i64: 8, 128>}, {transform_indices = @transform_6, window_bounds = array<i64: 16, 128>}]} {
    %c0 = arith.constant 0 : index
    %c0_0 = arith.constant 0 : index
    %0 = vector.load %arg1[%c0, %c0_0] : memref<16x128xbf16, #tpu.memory_space<vmem>>, vector<16x128xbf16>
    %c0_1 = arith.constant 0 : index
    %c0_2 = arith.constant 0 : index
    %1 = vector.load %arg6[%c0_1, %c0_2] : memref<8x128xf32, #tpu.memory_space<vmem>>, vector<1x128xf32>
    %c1 = arith.constant 1 : index
    %c0_3 = arith.constant 0 : index
    %2 = vector.load %arg6[%c1, %c0_3] : memref<8x128xf32, #tpu.memory_space<vmem>>, vector<1x128xf32>
    %c2 = arith.constant 2 : index
    %c0_4 = arith.constant 0 : index
    %3 = vector.load %arg6[%c2, %c0_4] : memref<8x128xf32, #tpu.memory_space<vmem>>, vector<1x128xf32>
    %c3 = arith.constant 3 : index
    %c0_5 = arith.constant 0 : index
    %4 = vector.load %arg6[%c3, %c0_5] : memref<8x128xf32, #tpu.memory_space<vmem>>, vector<1x128xf32>
    %c4 = arith.constant 4 : index
    %c0_6 = arith.constant 0 : index
    %5 = vector.load %arg6[%c4, %c0_6] : memref<8x128xf32, #tpu.memory_space<vmem>>, vector<1x128xf32>
    %c5 = arith.constant 5 : index
    %c0_7 = arith.constant 0 : index
    %6 = vector.load %arg6[%c5, %c0_7] : memref<8x128xf32, #tpu.memory_space<vmem>>, vector<1x128xf32>
    %c0_8 = arith.constant 0 : index
    %c0_9 = arith.constant 0 : index
    %7 = vector.load %arg2[%c0_8, %c0_9] : memref<128x128xbf16, #tpu.memory_space<vmem>>, vector<128x128xbf16>
    %cst = arith.constant dense<0.000000e+00> : vector<16x128xf32>
    %8 = tpu.matmul %0, %7, %cst {dimension_numbers = #tpu.dot_dimension_numbers<[1], [0], [0], [1], [0, 0, 1, 1], [], []>} : vector<16x128xbf16>, vector<128x128xbf16>, vector<16x128xf32> -> vector<16x128xf32>
    %9 = vector.broadcast %1 : vector<1x128xf32> to vector<16x128xf32>
    %10 = arith.addf %8, %9 : vector<16x128xf32>
    %11 = arith.truncf %10 : vector<16x128xf32> to vector<16x128xbf16>
    %c0_10 = arith.constant 0 : index
    %c0_11 = arith.constant 0 : index
    %12 = vector.load %arg3[%c0_10, %c0_11] : memref<128x128xbf16, #tpu.memory_space<vmem>>, vector<128x128xbf16>
    %cst_12 = arith.constant dense<0.000000e+00> : vector<16x128xf32>
    %13 = tpu.matmul %11, %12, %cst_12 {dimension_numbers = #tpu.dot_dimension_numbers<[1], [0], [0], [1], [0, 0, 1, 1], [], []>} : vector<16x128xbf16>, vector<128x128xbf16>, vector<16x128xf32> -> vector<16x128xf32>
    %14 = vector.broadcast %2 : vector<1x128xf32> to vector<16x128xf32>
    %15 = arith.addf %13, %14 : vector<16x128xf32>
    %cst_13 = arith.constant 0.000000e+00 : f32
    %16 = vector.broadcast %cst_13 : f32 to vector<16x128xf32>
    %17 = arith.maximumf %15, %16 : vector<16x128xf32>
    %18 = arith.truncf %17 : vector<16x128xf32> to vector<16x128xbf16>
    %c0_14 = arith.constant 0 : index
    %c0_15 = arith.constant 0 : index
    %19 = vector.load %arg4[%c0_14, %c0_15] : memref<128x128xbf16, #tpu.memory_space<vmem>>, vector<128x128xbf16>
    %cst_16 = arith.constant dense<0.000000e+00> : vector<16x128xf32>
    %20 = tpu.matmul %18, %19, %cst_16 {dimension_numbers = #tpu.dot_dimension_numbers<[1], [0], [0], [1], [0, 0, 1, 1], [], []>} : vector<16x128xbf16>, vector<128x128xbf16>, vector<16x128xf32> -> vector<16x128xf32>
    %21 = vector.broadcast %3 : vector<1x128xf32> to vector<16x128xf32>
    %22 = arith.addf %20, %21 : vector<16x128xf32>
    %cst_17 = arith.constant 0.000000e+00 : f32
    %23 = vector.broadcast %cst_17 : f32 to vector<16x128xf32>
    %24 = arith.maximumf %22, %23 : vector<16x128xf32>
    %25 = arith.truncf %24 : vector<16x128xf32> to vector<16x128xbf16>
    %c0_18 = arith.constant 0 : index
    %c0_19 = arith.constant 0 : index
    %26 = vector.load %arg5[%c0_18, %c0_19] : memref<128x128xbf16, #tpu.memory_space<vmem>>, vector<128x128xbf16>
    %cst_20 = arith.constant dense<0.000000e+00> : vector<16x128xf32>
    %27 = tpu.matmul %25, %26, %cst_20 {dimension_numbers = #tpu.dot_dimension_numbers<[1], [0], [0], [1], [0, 0, 1, 1], [], []>} : vector<16x128xbf16>, vector<128x128xbf16>, vector<16x128xf32> -> vector<16x128xf32>
    %28 = vector.broadcast %4 : vector<1x128xf32> to vector<16x128xf32>
    %29 = arith.addf %27, %28 : vector<16x128xf32>
    %cst_21 = arith.constant 0.000000e+00 : f32
    %30 = vector.broadcast %cst_21 : f32 to vector<16x128xf32>
    %31 = arith.subf %30, %29 : vector<16x128xf32>
    %32 = math.exp %31 : vector<16x128xf32>
    %cst_22 = arith.constant 1.000000e+00 : f32
    %33 = vector.broadcast %cst_22 : f32 to vector<16x128xf32>
    %34 = arith.addf %33, %32 : vector<16x128xf32>
    %35 = tpu.reciprocal %34 {approx = true} : vector<16x128xf32> -> vector<16x128xf32>
    %36 = vector.broadcast %5 : vector<1x128xf32> to vector<16x128xf32>
    %37 = arith.mulf %35, %36 : vector<16x128xf32>
    %38 = vector.broadcast %6 : vector<1x128xf32> to vector<16x128xf32>
    %39 = arith.addf %37, %38 : vector<16x128xf32>
    %40 = arith.truncf %39 : vector<16x128xf32> to vector<16x128xbf16>
    %c0_23 = arith.constant 0 : index
    %c0_24 = arith.constant 0 : index
    %41 = vector.load %arg7[%c0_23, %c0_24] : memref<16x128xbf16, #tpu.memory_space<vmem>>, vector<16x128xbf16>
    tpu.vector_store %arg7[%c0_23, %c0_24], %40 {strides = array<i32>} : memref<16x128xbf16, #tpu.memory_space<vmem>>, vector<16x128xbf16>,
    return
  }
  func.func @transform_0(%arg0: i32) -> (i32, i32) {
    %c0_i32 = arith.constant 0 : i32
    %c0_i32_0 = arith.constant 0 : i32
    return %arg0, %c0_i32 : i32, i32
  }
  func.func @transform_1(%arg0: i32) -> (i32, i32) {
    %c0_i32 = arith.constant 0 : i32
    %c0_i32_0 = arith.constant 0 : i32
    %c0_i32_1 = arith.constant 0 : i32
    return %c0_i32, %c0_i32_0 : i32, i32
  }
  func.func @transform_2(%arg0: i32) -> (i32, i32) {
    %c0_i32 = arith.constant 0 : i32
    %c0_i32_0 = arith.constant 0 : i32
    %c0_i32_1 = arith.constant 0 : i32
    return %c0_i32, %c0_i32_0 : i32, i32
  }
  func.func @transform_3(%arg0: i32) -> (i32, i32) {
    %c0_i32 = arith.constant 0 : i32
    %c0_i32_0 = arith.constant 0 : i32
    %c0_i32_1 = arith.constant 0 : i32
    return %c0_i32, %c0_i32_0 : i32, i32
  }
  func.func @transform_4(%arg0: i32) -> (i32, i32) {
    %c0_i32 = arith.constant 0 : i32
    %c0_i32_0 = arith.constant 0 : i32
    %c0_i32_1 = arith.constant 0 : i32
    return %c0_i32, %c0_i32_0 : i32, i32
  }
  func.func @transform_5(%arg0: i32) -> (i32, i32) {
    %c0_i32 = arith.constant 0 : i32
    %c0_i32_0 = arith.constant 0 : i32
    %c0_i32_1 = arith.constant 0 : i32
    return %c0_i32, %c0_i32_0 : i32, i32
  }
  func.func @transform_6(%arg0: i32) -> (i32, i32) {
    %c0_i32 = arith.constant 0 : i32
    %c0_i32_0 = arith.constant 0 : i32
    return %arg0, %c0_i32 : i32, i32
  }
}

</mosaic_0001>

<bundles_post_ra>
// kernel: forward.1
= control target key start
LH: loop header
LB: loop body
LE: loop exit
PB: predicated region body
PF: predicated region fallthrough
CT: control target
= control target key end

     0   :  { %11 = vsyncpa [#allocation3], 0  ;;  %s819_s0 = inlined_call_operand.vmem [shape: bf16[16,128], index: 0, kind: input, shape index: {}]   ;;  %s820_s1 = inlined_call_operand.hbm [shape: bf16[128,128], index: 1, kind: input, shape index: {}]   ;;  %s821_s2 = inlined_call_operand.hbm [shape: bf16[128,128], index: 2, kind: input, shape index: {}]   ;;  %s822_s3 = inlined_call_operand.hbm [shape: bf16[128,128], index: 3, kind: input, shape index: {}]   ;;  %s823_s4 = inlined_call_operand.hbm [shape: bf16[128,128], index: 4, kind: input, shape index: {}]   ;;  %s824_s5 = inlined_call_operand.vmem [shape: f32[8,128], index: 5, kind: input, shape index: {}]   ;;  %s825_s6 = inlined_call_operand.vmem [shape: bf16[16,128], index: 6, kind: output, shape index: {}]  }
   0x1   :  { %12 = vsyncpa [#allocation5], 0 }
   0x2   :  { %13 = vsyncpa [#allocation8], 0  ;;  %s33_s23 = sshll.u32 %s821_s2, 4  ;;  %s742_s24 = smov [#allocation4]   ;;  %s34_s23 = int_to_ptr.hbm [resolvable:$true] %s33_s23 }
   0x3   :  { %s35_s25 = sshll.u32 %s742_s24, 4  ;;  %s20_s28 = sshll.u32 %s820_s1, 4  ;;  %s36_s25 = int_to_ptr.vmem [resolvable:$true] %s35_s25  ;;  %s21_s28 = int_to_ptr.hbm [resolvable:$true] %s20_s28 }
   0x4   :  { %s743_s29 = smov 64   ;;  %s744_s30 = smov 4  }
   0x5   :  { %41 = dma.hbm_to_vmem [thread:$0]  %s34_s23, 1024, %s36_s25, [#allocation5], %s743_s29, %s743_s29, %s744_s30  }
   0x6   :  { %s745_s7 = smov [#allocation2]   ;;  %s46_s11 = sshll.u32 %s822_s3, 4  ;;  %s47_s11 = int_to_ptr.hbm [resolvable:$true] %s46_s11 }
   0x7   :  { %s22_s8 = sshll.u32 %s745_s7, 4  ;;  %s59_s13 = sshll.u32 %s823_s4, 4  ;;  %s23_s8 = int_to_ptr.vmem [resolvable:$true] %s22_s8  ;;  %s60_s13 = int_to_ptr.hbm [resolvable:$true] %s59_s13 }
   0x8   :  { %28 = dma.hbm_to_vmem [thread:$0]  %s21_s28, 1024, %s23_s8, [#allocation3], %s743_s29, %s743_s29, %s744_s30  }
   0x9   :  { %s746_s14 = smov [#allocation6]   ;;  %s747_s1 = smov [#allocation7]  }
   0xa   :  { %s48_s15 = sshll.u32 %s746_s14, 4  ;;  %s61_s16 = sshll.u32 %s747_s1, 4  ;;  %s49_s15 = int_to_ptr.vmem [resolvable:$true] %s48_s15  ;;  %s62_s16 = int_to_ptr.vmem [resolvable:$true] %s61_s16 }
   0xb   :  { %54 = dma.hbm_to_vmem [thread:$0]  %s47_s11, 1024, %s49_s15, [#allocation5], %s743_s29, %s743_s29, %s744_s30  }
   0xc   :  { %67 = dma.hbm_to_vmem [thread:$0]  %s60_s13, 1024, %s62_s16, [#allocation8], %s743_s29, %s743_s29, %s744_s30  }
   0xd   :  { %736 = dma.done.wait [#allocation3], 1024  }
   0xe   :  { %737 = vsyncadd [#allocation3], 4294966272 }
   0xf   :  { %738 = dma.done.wait [#allocation5], 2048  }
  0x10   :  { %739 = vsyncadd [#allocation5], 4294965248 }
  0x11   :  { %740 = dma.done.wait [#allocation8], 1024  }
  0x12   :  { %741 = vsyncadd [#allocation8], 4294966272  ;;  %v590_v0 = vld [vmem:[#allocation2 + $0x38] sm:$0xff]  ;;  %v589_v1 = vld [vmem:[#allocation2 + $0x30] sm:$0xff] }
  0x13   :  { %165 = vmatpush.bf16.msra.mxu0 %v590_v0  ;;  %v598_v2 = vld [vmem:[#allocation4 + $0x38] sm:$0xff]  ;;  %v588_v3 = vld [vmem:[#allocation2 + $0x28] sm:$0xff]  ;;  %v597_v4 = vld [vmem:[#allocation4 + $0x30] sm:$0xff] }
  0x14   :  { %245 = vmatpush.bf16.msra.mxu1 %v598_v2  ;;  %v596_v5 = vld [vmem:[#allocation4 + $0x28] sm:$0xff]  ;;  %v587_v6 = vld [vmem:[#allocation2 + $0x20] sm:$0xff]  ;;  %v586_v8 = vld [vmem:[#allocation2 + $0x18] sm:$0xff] }
  0x15   :  { %v595_v7 = vld [vmem:[#allocation4 + $0x20] sm:$0xff]  ;;  %v594_v9 = vld [vmem:[#allocation4 + $0x18] sm:$0xff]  ;;  %v585_v10 = vld [vmem:[#allocation2 + $0x10] sm:$0xff] }
  0x16   :  { %v584_v11 = vld [vmem:[#allocation2 + $0x8] sm:$0xff]  ;;  %v583_v12 = vld [vmem:[#allocation2] sm:$0xff]  ;;  %v593_v14 = vld [vmem:[#allocation4 + $0x10] sm:$0xff] }
  0x17   :  { %166 = vmatpush.bf16.msra.mxu0 %v589_v1  ;;  %v582_v13 = vld [vmem:[%s819_s0] sm:$0xff]  ;;  %v592_v15 = vld [vmem:[#allocation4 + $0x8] sm:$0xff]  ;;  %v606_v17 = vld [vmem:[#allocation6 + $0x38] sm:$0xff] }
  0x18   :  { %246 = vmatpush.bf16.msra.mxu1 %v597_v4  ;;  %v591_v16 = vld [vmem:[#allocation4] sm:$0xff]  ;;  %327 = vmatpush.bf16.msra.mxu2 %v606_v17  ;;  %v605_v18 = vld [vmem:[#allocation6 + $0x30] sm:$0xff]  ;;  %v604_v19 = vld [vmem:[#allocation6 + $0x28] sm:$0xff] }
  0x19   :  { %v603_v20 = vld [vmem:[#allocation6 + $0x20] sm:$0xff]  ;;  %v602_v27 = vld [vmem:[#allocation6 + $0x18] sm:$0xff]  ;;  %v601_v28 = vld [vmem:[#allocation6 + $0x10] sm:$0xff] }
  0x1a   :  { %v626_v22 = vld [vmem:[%s824_s5] ss:$0 sm:$0xff]  ;;  %v600_v29 = vld [vmem:[#allocation6 + $0x8] sm:$0xff]  ;;  %v614_v31 = vld [vmem:[#allocation7 + $0x38] sm:$0xff] }
  0x1b   :  { %167 = vmatpush.bf16.msra.mxu0 %v588_v3  ;;  %v599_v30 = vld [vmem:[#allocation6] sm:$0xff]  ;;  %409 = vmatpush.bf16.msra.mxu3 %v614_v31  ;;  %v613_v32 = vld [vmem:[#allocation7 + $0x30] sm:$0xff]  ;;  %v612_v33 = vld [vmem:[#allocation7 + $0x28] sm:$0xff] }
  0x1c   :  { %247 = vmatpush.bf16.msra.mxu1 %v596_v5  ;;  %328 = vmatpush.bf16.msra.mxu2 %v605_v18  ;;  %v611_v34 = vld [vmem:[#allocation7 + $0x20] sm:$0xff]  ;;  %v610_v43 = vld [vmem:[#allocation7 + $0x18] sm:$0xff]  ;;  %v609_v44 = vld [vmem:[#allocation7 + $0x10] sm:$0xff] }
  0x1d   :  { %v627_v36 = vld [vmem:[%s824_s5 + $0x1] ss:$0 sm:$0xff]  ;;  %v608_v45 = vld [vmem:[#allocation7 + $0x8] sm:$0xff]  ;;  %v628_v48 = vld [vmem:[%s824_s5 + $0x2] ss:$0 sm:$0xff] }
  0x1e   :  { %v607_v46 = vld [vmem:[#allocation7] sm:$0xff] }
  0x1f   :  { %168 = vmatpush.bf16.msra.mxu0 %v587_v6  ;;  %410 = vmatpush.bf16.msra.mxu3 %v613_v32  ;;  %v629_v55 = vld [vmem:[%s824_s5 + $0x3] ss:$0 sm:$0xff]  ;;  %v630_v4 = vld [vmem:[%s824_s5 + $0x4] ss:$0 sm:$0xff] }
  0x20   :  { %248 = vmatpush.bf16.msra.mxu1 %v595_v7  ;;  %329 = vmatpush.bf16.msra.mxu2 %v604_v19  ;;  %v631_v7 = vld [vmem:[%s824_s5 + $0x5] ss:$0 sm:$0xff] }
  0x23   :  { %169 = vmatpush.bf16.msra.mxu0 %v586_v8  ;;  %411 = vmatpush.bf16.msra.mxu3 %v612_v33 }
  0x24   :  { %249 = vmatpush.bf16.msra.mxu1 %v594_v9  ;;  %330 = vmatpush.bf16.msra.mxu2 %v603_v20 }
  0x27   :  { %170 = vmatpush.bf16.msra.mxu0 %v585_v10  ;;  %412 = vmatpush.bf16.msra.mxu3 %v611_v34 }
  0x28   :  { %250 = vmatpush.bf16.msra.mxu1 %v593_v14  ;;  %331 = vmatpush.bf16.msra.mxu2 %v602_v27 }
  0x2b   :  { %171 = vmatpush.bf16.msra.mxu0 %v584_v11  ;;  %413 = vmatpush.bf16.msra.mxu3 %v610_v43 }
  0x2c   :  { %251 = vmatpush.bf16.msra.mxu1 %v592_v15  ;;  %332 = vmatpush.bf16.msra.mxu2 %v601_v28 }
  0x2f   :  { %172 = vmatpush.bf16.msra.mxu0 %v583_v12  ;;  %414 = vmatpush.bf16.msra.mxu3 %v609_v44 }
  0x30   :  { %252 = vmatpush.bf16.msra.mxu1 %v591_v16  ;;  %333 = vmatpush.bf16.msra.mxu2 %v600_v29 }
  0x32   :  { %173 = vmatmul.bf16.vlgmr.msra.gmra.mxu0 %v582_v13 }
  0x33   :  { %415 = vmatpush.bf16.msra.mxu3 %v608_v45 }
  0x34   :  { %334 = vmatpush.bf16.msra.mxu2 %v599_v30 }
  0x37   :  { %416 = vmatpush.bf16.msra.mxu3 %v607_v46 }
  0xaf   :  { %v174_v21 = vpop.f32.mrf.mxu0 }
  0xb0   :  { %v175_v24 = vadd.f32 %v626_v22, %v174_v21 }
  0xb7   :  { %v176_v23 = vpop.f32.mrf.mxu0 }
  0xb8   :  { %v177_v25 = vadd.f32 %v626_v22, %v176_v23 }
  0xba   :  { %v179_v26 = vpack.c.bf16 %v177_v25, %v175_v24 }
  0xbc   :  { %253 = vmatmul.bf16.vlgmr.msra.gmra.mxu1 %v179_v26 }
 0x139   :  { %v254_v35 = vpop.f32.mrf.mxu1 }
 0x13a   :  { %v255_v37 = vadd.f32 %v627_v36, %v254_v35 }
 0x13c   :  { %v259_v40 = vmax.f32 %v255_v37, 0.0 }
 0x141   :  { %v256_v38 = vpop.f32.mrf.mxu1 }
 0x142   :  { %v257_v39 = vadd.f32 %v627_v36, %v256_v38 }
 0x144   :  { %v260_v41 = vmax.f32 %v257_v39, 0.0 }
 0x146   :  { %v261_v42 = vpack.c.bf16 %v260_v41, %v259_v40 }
 0x148   :  { %335 = vmatmul.bf16.vlgmr.msra.gmra.mxu2 %v261_v42 }
 0x1cb   :  { %v336_v47 = vpop.f32.mrf.mxu2 }
 0x1cc   :  { %v337_v49 = vadd.f32 %v628_v48, %v336_v47 }
 0x1ce   :  { %v341_v52 = vmax.f32 %v337_v49, 0.0 }
 0x1d3   :  { %v338_v50 = vpop.f32.mrf.mxu2 }
 0x1d4   :  { %v339_v51 = vadd.f32 %v628_v48, %v338_v50 }
 0x1d6   :  { %v342_v53 = vmax.f32 %v339_v51, 0.0 }
 0x1d8   :  { %v343_v54 = vpack.c.bf16 %v342_v53, %v341_v52 }
 0x1da   :  { %417 = vmatmul.bf16.vlgmr.msra.gmra.mxu3 %v343_v54 }
 0x25d   :  { %v418_v56 = vpop.f32.mrf.mxu3 }
 0x25e   :  { %v419_v57 = vadd.f32 %v629_v55, %v418_v56 }
 0x260   :  { %v423_v58 = vsub.f32 0.0, %v419_v57 }
 0x262   :  { %v425_v59 = vmul.f32 1.442695, %v423_v58 }
 0x264   :  { %632 = vpow2.f32 %v425_v59 }
 0x265   :  { %v420_v60 = vpop.f32.mrf.mxu3 }
 0x266   :  { %v421_v61 = vadd.f32 %v629_v55, %v420_v60 }
 0x268   :  { %v424_v62 = vsub.f32 0.0, %v421_v61 }
 0x26a   :  { %v633_v63 = vpop.eup %632  ;;  %v427_v0 = vmul.f32 1.442695, %v424_v62 }
 0x26b   :  { %v429_v1 = vadd.f32 1.0, %v633_v63 }
 0x26c   :  { %634 = vpow2.f32 %v427_v0 }
 0x26d   :  { %636 = vrcp.f32 %v429_v1 }
 0x272   :  { %v635_v2 = vpop.eup %634 }
 0x273   :  { %v430_v3 = vadd.f32 1.0, %v635_v2  ;;  %v637_v5 = vpop.eup %636 }
 0x274   :  { %v434_v6 = vmul.f32 %v637_v5, %v630_v4 }
 0x275   :  { %638 = vrcp.f32 %v430_v3 }
 0x276   :  { %v437_v10 = vadd.f32 %v631_v7, %v434_v6 }
 0x27b   :  { %v639_v8 = vpop.eup %638 }
 0x27c   :  { %v435_v9 = vmul.f32 %v639_v8, %v630_v4 }
 0x27e   :  { %v438_v11 = vadd.f32 %v631_v7, %v435_v9 }
 0x280   :  { %v618_v12 = vpack.c.bf16 %v438_v11, %v437_v10 }
 0x282   :  { %619 = vst [vmem:[%s825_s6] sm:$0xff] %v618_v12  }
 0x283   :  { %447 = vsyncpa [#allocation3], 1 }
 0x284   :  { %448 = vsyncpa [#allocation5], 1 }
 0x285   :  { %449 = vsyncpa [#allocation8], 1 }

</bundles_post_ra>
